<compile_context>
chip_gen: v6e
topology: v6e:2x2x1
jax: 0.10.0
libtpu: 0.0.40
codegen_flags: <defaults>
</compile_context>

<pallas_src>
import jax
import jax.numpy as jnp
from jax.experimental import pallas as pl
from jax.experimental.pallas import tpu as pltpu


def _round_up(x: int, m: int) -> int:
    return ((x + m - 1) // m) * m


def _torus_splat_batched_kernel(scal_ref, pts_ref, refs_ref, es_ref, eo_ref,
                                out_ref):
    # scal_ref : SMEM (3,)  = [outer_radius, hole_radius, amplitude]
    # pts_ref  : VMEM (D, TB)   -- batch of points, batch on lanes
    # refs_ref : VMEM (D, P+1)  -- column 0 = center, columns 1..P = entry pts
    # es_ref   : VMEM (P, 1)    -- entry strengths
    # eo_ref   : VMEM (P, 1)    -- entry orientations
    # out_ref  : VMEM (1, TB)   -- per-point attention weights (lane dense)
    outer_r = jnp.abs(scal_ref[0]) + 1e-6
    hole_r = jnp.abs(scal_ref[1])
    amplitude = scal_ref[2]

    pts = pts_ref[...]                               # (D, TB)
    P = es_ref.shape[0]

    def sqdist(col):
        d = pts - refs_ref[:, col:col + 1]           # (D, TB) lane broadcast
        return jnp.sum(d * d, axis=0, keepdims=True)  # (1, TB) sublane reduce

    # ---- torus surface term (reference column 0 = center) ----
    point_distance = jnp.sqrt(sqdist(0))             # (1, TB)
    major = jnp.abs(point_distance - outer_r)
    # scalar select of the subtrahend reproduces the hole_r < 0.1 branch:
    #   hole_r < 0.1 : |major - 0|      == major
    #   else         : |major - hole_r|
    hole_sub = jnp.where(hole_r < 0.1, 0.0, hole_r)
    torus_d = jnp.abs(major - hole_sub)
    attention = jnp.exp(-0.5 * torus_d * torus_d)    # (1, TB)

    # ---- entry point affinities (tiny (P,1) coefficient vector) ----
    strengths = jax.nn.sigmoid(es_ref[...])          # (P, 1)
    orient = jnp.tanh(eo_ref[...])                   # (P, 1)
    coeff = jnp.where(strengths > 0.1, strengths * orient,
                      jnp.zeros_like(strengths))     # (P, 1)

    for j in range(P):                               # P is tiny; unrolled
        w_j = coeff[j:j + 1, :]                      # (1, 1)
        attention = attention + w_j * jnp.exp(-0.5 * sqdist(j + 1))

    out_ref[...] = jax.nn.sigmoid(amplitude) * attention


def prepare_torus_splat_params(center, outer_radius, hole_radius, entry_points,
                               entry_strengths, entry_orientations, amplitude):
    """Pre-layout module parameters ONCE in kernel layout; reuse across calls."""
    D = center.shape[0]
    P = entry_points.shape[0]
    scalars = jnp.stack([outer_radius, hole_radius, amplitude]).astype(jnp.float32)
    refs = jnp.concatenate(
        [center.reshape(D, 1).astype(jnp.float32),
         entry_points.astype(jnp.float32).T], axis=1)          # (D, P+1)
    es = entry_strengths.reshape(P, 1).astype(jnp.float32)     # (P, 1)
    eo = entry_orientations.reshape(P, 1).astype(jnp.float32)  # (P, 1)
    return scalars, refs, es, eo


@jax.jit
def evolving_torus_splat_forward_batch(points, scalars, refs, es, eo):
    """points: (B, D) f32 -> (B,) f32 attention weights."""
    B, D = points.shape
    P = es.shape[0]

    # Batch on the lane axis; pick a lane-tile that is a multiple of 128.
    TB = 512 if B >= 512 else max(128, _round_up(B, 128))
    B_pad = _round_up(B, TB)

    pts_t = jnp.transpose(points.astype(jnp.float32))           # (D, B)
    if B_pad != B:
        pts_t = jnp.pad(pts_t, ((0, 0), (0, B_pad - B)))

    grid_spec = pltpu.PrefetchScalarGridSpec(
        num_scalar_prefetch=1,                                   # scalars -> SMEM
        grid=(B_pad // TB,),
        in_specs=[
            pl.BlockSpec((D, TB), lambda i, s: (0, i)),          # points tile
            pl.BlockSpec((D, P + 1), lambda i, s: (0, 0)),       # refs (resident)
            pl.BlockSpec((P, 1), lambda i, s: (0, 0)),           # strengths
            pl.BlockSpec((P, 1), lambda i, s: (0, 0)),           # orientations
        ],
        out_specs=pl.BlockSpec((1, TB), lambda i, s: (0, i)),    # lane-dense out
    )

    out = pl.pallas_call(
        _torus_splat_batched_kernel,
        out_shape=jax.ShapeDtypeStruct((1, B_pad), jnp.float32),
        grid_spec=grid_spec,
        compiler_params=pltpu.CompilerParams(
            dimension_semantics=("parallel",)),                  # megacore on v7x
    )(scalars, pts_t, refs, es, eo)

    return out[0, :B]


def evolving_torus_splat_forward(point, scalars, refs, es, eo):
    """Single-point convenience matching the PyTorch module's forward()."""
    return evolving_torus_splat_forward_batch(point[None, :], scalars, refs,
                                              es, eo)[0]


def _reference_forward(point, center, outer_radius, hole_radius, entry_points,
                       entry_strengths, entry_orientations, amplitude):
    """Pure-JAX reference mirroring the PyTorch forward, for sanity checking."""
    rel = point - center
    pd = jnp.sqrt(jnp.sum(rel * rel))
    outer_r = jnp.abs(outer_radius) + 1e-6
    hole_r = jnp.abs(hole_radius)
    major = jnp.abs(pd - outer_r)
    torus_d = jnp.where(hole_r < 0.1, major, jnp.abs(major - hole_r))
    surface = jnp.exp(-0.5 * torus_d ** 2)

    diffs = point[None, :] - entry_points                        # (P, D)
    ed = jnp.sqrt(jnp.sum(diffs * diffs, axis=1))                # (P,)
    strengths = jax.nn.sigmoid(entry_strengths)
    orient = jnp.tanh(entry_orientations)
    aff = jnp.exp(-0.5 * ed ** 2) * strengths * orient
    aff = jnp.where(strengths > 0.1, aff, 0.0)
    return jax.nn.sigmoid(amplitude) * (surface + jnp.sum(aff))


if __name__ == "__main__":
    embedding_dim = 32
    max_entry_points = 4

    key = jax.random.PRNGKey(0)
    k_center, k_ep, k_eo, k_points = jax.random.split(key, 4)

    # Deterministic parameter init (mirrors the torch __init__ shapes/scales).
    center = jax.random.normal(k_center, (embedding_dim,), jnp.float32) * 0.5
    outer_radius = jnp.float32(1.0)
    hole_radius = jnp.float32(0.01)
    entry_points = jax.random.normal(k_ep, (max_entry_points, embedding_dim),
                                     jnp.float32) * 0.3
    entry_strengths = jnp.ones((max_entry_points,), jnp.float32) * 0.1
    entry_orientations = jax.random.normal(k_eo, (max_entry_points,),
                                           jnp.float32)
    amplitude = jnp.float32(1.0)
    # growth_threshold is not used in forward().

    params = prepare_torus_splat_params(center, outer_radius, hole_radius,
                                        entry_points, entry_strengths,
                                        entry_orientations, amplitude)

    # --- batched forward over a small point batch (exercises padding path) ---
    batch = 200
    points = jax.random.normal(k_points, (batch, embedding_dim), jnp.float32)
    out_batch = jax.block_until_ready(
        evolving_torus_splat_forward_batch(points, *params))

    ref_batch = jax.vmap(
        lambda p: _reference_forward(p, center, outer_radius, hole_radius,
                                     entry_points, entry_strengths,
                                     entry_orientations, amplitude))(points)
    assert out_batch.shape == (batch,)
    assert jnp.allclose(out_batch, ref_batch, rtol=1e-5, atol=1e-6), \
        (out_batch, ref_batch)

    # --- single-point convenience path (the module's original signature) ---
    out_single = jax.block_until_ready(
        evolving_torus_splat_forward(points[0], *params))
    assert jnp.allclose(out_single, ref_batch[0], rtol=1e-5, atol=1e-6), \
        (out_single, ref_batch[0])

    print("KERNEL_OK")
</pallas_src>

<mosaic_0001>
module attributes {stable_mosaic.version = 11 : i64} {
  func.func @_torus_splat_batched_kernel(%arg0: i32, %arg1: memref<3xf32, #tpu.memory_space<smem>>, %arg2: memref<32x256xf32, #tpu.memory_space<vmem>>, %arg3: memref<32x5xf32, #tpu.memory_space<vmem>>, %arg4: memref<4x1xf32, #tpu.memory_space<vmem>>, %arg5: memref<4x1xf32, #tpu.memory_space<vmem>>, %arg6: memref<1x256xf32, #tpu.memory_space<vmem>>) attributes {dimension_semantics = [#tpu.dimension_semantics<parallel>], iteration_bounds = array<i64: 1>, scalar_prefetch = 1 : i64, scratch_operands = 0 : i64, tpu.core_type = #tpu.core_type<tc>, window_params = [{transform_indices = @transform_0, window_bounds = array<i64: 32, 256>}, {pipeline_mode = #tpu.pipeline_mode<synchronous>, transform_indices = @transform_1, window_bounds = array<i64: 32, 5>}, {pipeline_mode = #tpu.pipeline_mode<synchronous>, transform_indices = @transform_2, window_bounds = array<i64: 4, 1>}, {pipeline_mode = #tpu.pipeline_mode<synchronous>, transform_indices = @transform_3, window_bounds = array<i64: 4, 1>}, {transform_indices = @transform_4, window_bounds = array<i64: 1, 256>}]} {
    %c0 = arith.constant 0 : index
    %0 = memref.load %arg1[%c0] : memref<3xf32, #tpu.memory_space<smem>>
    %1 = math.absf %0 : f32
    %cst = arith.constant 9.99999997E-7 : f32
    %2 = arith.addf %1, %cst : f32
    %c1 = arith.constant 1 : index
    %3 = memref.load %arg1[%c1] : memref<3xf32, #tpu.memory_space<smem>>
    %4 = math.absf %3 : f32
    %c2 = arith.constant 2 : index
    %5 = memref.load %arg1[%c2] : memref<3xf32, #tpu.memory_space<smem>>
    %c0_0 = arith.constant 0 : index
    %c0_1 = arith.constant 0 : index
    %6 = vector.load %arg2[%c0_0, %c0_1] : memref<32x256xf32, #tpu.memory_space<vmem>>, vector<32x256xf32>
    %c0_2 = arith.constant 0 : index
    %c0_3 = arith.constant 0 : index
    %7 = vector.load %arg3[%c0_2, %c0_3] : memref<32x5xf32, #tpu.memory_space<vmem>>, vector<32x1xf32>
    %8 = vector.broadcast %7 : vector<32x1xf32> to vector<32x256xf32>
    %9 = arith.subf %6, %8 : vector<32x256xf32>
    %10 = arith.mulf %9, %9 : vector<32x256xf32>
    %cst_4 = arith.constant dense<0.000000e+00> : vector<256xf32>
    %11 = vector.multi_reduction <add>, %10, %cst_4 [0] : vector<32x256xf32> to vector<256xf32>
    %12 = vector.shape_cast %11 : vector<256xf32> to vector<1x256xf32>
    %13 = math.sqrt %12 : vector<1x256xf32>
    %14 = vector.broadcast %2 : f32 to vector<1x256xf32>
    %15 = arith.subf %13, %14 : vector<1x256xf32>
    %16 = math.absf %15 : vector<1x256xf32>
    %cst_5 = arith.constant 1.000000e-01 : f32
    %17 = arith.cmpf olt, %4, %cst_5 : f32
    %cst_6 = arith.constant 0.000000e+00 : f32
    %18 = arith.select %17, %cst_6, %4 : f32
    %19 = vector.broadcast %18 : f32 to vector<1x256xf32>
    %20 = arith.subf %16, %19 : vector<1x256xf32>
    %21 = math.absf %20 : vector<1x256xf32>
    %cst_7 = arith.constant -5.000000e-01 : f32
    %22 = vector.broadcast %cst_7 : f32 to vector<1x256xf32>
    %23 = arith.mulf %22, %21 : vector<1x256xf32>
    %24 = arith.mulf %23, %21 : vector<1x256xf32>
    %25 = math.exp %24 : vector<1x256xf32>
    %c0_8 = arith.constant 0 : index
    %c0_9 = arith.constant 0 : index
    %26 = vector.load %arg4[%c0_8, %c0_9] : memref<4x1xf32, #tpu.memory_space<vmem>>, vector<4x1xf32>
    %27 = arith.negf %26 : vector<4x1xf32>
    %28 = math.exp %27 : vector<4x1xf32>
    %cst_10 = arith.constant 1.000000e+00 : f32
    %29 = vector.broadcast %cst_10 : f32 to vector<4x1xf32>
    %30 = arith.addf %29, %28 : vector<4x1xf32>
    %31 = arith.divf %29, %30 : vector<4x1xf32>
    %c0_11 = arith.constant 0 : index
    %c0_12 = arith.constant 0 : index
    %32 = vector.load %arg5[%c0_11, %c0_12] : memref<4x1xf32, #tpu.memory_space<vmem>>, vector<4x1xf32>
    %33 = math.tanh %32 : vector<4x1xf32>
    %cst_13 = arith.constant 1.000000e-01 : f32
    %34 = vector.broadcast %cst_13 : f32 to vector<4x1xf32>
    %35 = arith.cmpf ogt, %31, %34 : vector<4x1xf32>
    %36 = arith.mulf %31, %33 : vector<4x1xf32>
    %cst_14 = arith.constant 0.000000e+00 : f32
    %37 = vector.broadcast %cst_14 : f32 to vector<4x1xf32>
    %38 = arith.select %35, %36, %37 : vector<4x1xi1>, vector<4x1xf32>
    %39 = vector.extract_strided_slice %38 {offsets = [0, 0], sizes = [1, 1], strides = [1, 1]} : vector<4x1xf32> to vector<1x1xf32>
    %c0_15 = arith.constant 0 : index
    %c1_16 = arith.constant 1 : index
    %40 = vector.load %arg3[%c0_15, %c1_16] : memref<32x5xf32, #tpu.memory_space<vmem>>, vector<32x1xf32>
    %41 = vector.broadcast %40 : vector<32x1xf32> to vector<32x256xf32>
    %42 = arith.subf %6, %41 : vector<32x256xf32>
    %43 = arith.mulf %42, %42 : vector<32x256xf32>
    %cst_17 = arith.constant dense<0.000000e+00> : vector<256xf32>
    %44 = vector.multi_reduction <add>, %43, %cst_17 [0] : vector<32x256xf32> to vector<256xf32>
    %45 = vector.shape_cast %44 : vector<256xf32> to vector<1x256xf32>
    %cst_18 = arith.constant -5.000000e-01 : f32
    %46 = vector.broadcast %cst_18 : f32 to vector<1x256xf32>
    %47 = arith.mulf %46, %45 : vector<1x256xf32>
    %48 = math.exp %47 : vector<1x256xf32>
    %49 = vector.broadcast %39 : vector<1x1xf32> to vector<1x256xf32>
    %50 = arith.mulf %49, %48 : vector<1x256xf32>
    %51 = arith.addf %25, %50 : vector<1x256xf32>
    %52 = vector.extract_strided_slice %38 {offsets = [1, 0], sizes = [1, 1], strides = [1, 1]} : vector<4x1xf32> to vector<1x1xf32>
    %c0_19 = arith.constant 0 : index
    %c2_20 = arith.constant 2 : index
    %53 = vector.load %arg3[%c0_19, %c2_20] : memref<32x5xf32, #tpu.memory_space<vmem>>, vector<32x1xf32>
    %54 = vector.broadcast %53 : vector<32x1xf32> to vector<32x256xf32>
    %55 = arith.subf %6, %54 : vector<32x256xf32>
    %56 = arith.mulf %55, %55 : vector<32x256xf32>
    %cst_21 = arith.constant dense<0.000000e+00> : vector<256xf32>
    %57 = vector.multi_reduction <add>, %56, %cst_21 [0] : vector<32x256xf32> to vector<256xf32>
    %58 = vector.shape_cast %57 : vector<256xf32> to vector<1x256xf32>
    %cst_22 = arith.constant -5.000000e-01 : f32
    %59 = vector.broadcast %cst_22 : f32 to vector<1x256xf32>
    %60 = arith.mulf %59, %58 : vector<1x256xf32>
    %61 = math.exp %60 : vector<1x256xf32>
    %62 = vector.broadcast %52 : vector<1x1xf32> to vector<1x256xf32>
    %63 = arith.mulf %62, %61 : vector<1x256xf32>
    %64 = arith.addf %51, %63 : vector<1x256xf32>
    %65 = vector.extract_strided_slice %38 {offsets = [2, 0], sizes = [1, 1], strides = [1, 1]} : vector<4x1xf32> to vector<1x1xf32>
    %c0_23 = arith.constant 0 : index
    %c3 = arith.constant 3 : index
    %66 = vector.load %arg3[%c0_23, %c3] : memref<32x5xf32, #tpu.memory_space<vmem>>, vector<32x1xf32>
    %67 = vector.broadcast %66 : vector<32x1xf32> to vector<32x256xf32>
    %68 = arith.subf %6, %67 : vector<32x256xf32>
    %69 = arith.mulf %68, %68 : vector<32x256xf32>
    %cst_24 = arith.constant dense<0.000000e+00> : vector<256xf32>
    %70 = vector.multi_reduction <add>, %69, %cst_24 [0] : vector<32x256xf32> to vector<256xf32>
    %71 = vector.shape_cast %70 : vector<256xf32> to vector<1x256xf32>
    %cst_25 = arith.constant -5.000000e-01 : f32
    %72 = vector.broadcast %cst_25 : f32 to vector<1x256xf32>
    %73 = arith.mulf %72, %71 : vector<1x256xf32>
    %74 = math.exp %73 : vector<1x256xf32>
    %75 = vector.broadcast %65 : vector<1x1xf32> to vector<1x256xf32>
    %76 = arith.mulf %75, %74 : vector<1x256xf32>
    %77 = arith.addf %64, %76 : vector<1x256xf32>
    %78 = vector.extract_strided_slice %38 {offsets = [3, 0], sizes = [1, 1], strides = [1, 1]} : vector<4x1xf32> to vector<1x1xf32>
    %c0_26 = arith.constant 0 : index
    %c4 = arith.constant 4 : index
    %79 = vector.load %arg3[%c0_26, %c4] : memref<32x5xf32, #tpu.memory_space<vmem>>, vector<32x1xf32>
    %80 = vector.broadcast %79 : vector<32x1xf32> to vector<32x256xf32>
    %81 = arith.subf %6, %80 : vector<32x256xf32>
    %82 = arith.mulf %81, %81 : vector<32x256xf32>
    %cst_27 = arith.constant dense<0.000000e+00> : vector<256xf32>
    %83 = vector.multi_reduction <add>, %82, %cst_27 [0] : vector<32x256xf32> to vector<256xf32>
    %84 = vector.shape_cast %83 : vector<256xf32> to vector<1x256xf32>
    %cst_28 = arith.constant -5.000000e-01 : f32
    %85 = vector.broadcast %cst_28 : f32 to vector<1x256xf32>
    %86 = arith.mulf %85, %84 : vector<1x256xf32>
    %87 = math.exp %86 : vector<1x256xf32>
    %88 = vector.broadcast %78 : vector<1x1xf32> to vector<1x256xf32>
    %89 = arith.mulf %88, %87 : vector<1x256xf32>
    %90 = arith.addf %77, %89 : vector<1x256xf32>
    %91 = arith.negf %5 : f32
    %92 = math.exp %91 : f32
    %cst_29 = arith.constant 1.000000e+00 : f32
    %93 = arith.addf %cst_29, %92 : f32
    %94 = arith.divf %cst_29, %93 : f32
    %95 = vector.broadcast %94 : f32 to vector<1x256xf32>
    %96 = arith.mulf %95, %90 : vector<1x256xf32>
    %c0_30 = arith.constant 0 : index
    %c0_31 = arith.constant 0 : index
    %97 = vector.load %arg6[%c0_30, %c0_31] : memref<1x256xf32, #tpu.memory_space<vmem>>, vector<1x256xf32>
    tpu.vector_store %arg6[%c0_30, %c0_31], %96 {strides = array<i32>} : memref<1x256xf32, #tpu.memory_space<vmem>>, vector<1x256xf32>,
    return
  }
  func.func @transform_0(%arg0: i32, %arg1: memref<3xf32, #tpu.memory_space<smem>>) -> (i32, i32) {
    %c0_i32 = arith.constant 0 : i32
    %c0_i32_0 = arith.constant 0 : i32
    return %c0_i32, %arg0 : i32, i32
  }
  func.func @transform_1(%arg0: i32, %arg1: memref<3xf32, #tpu.memory_space<smem>>) -> (i32, i32) {
    %c0_i32 = arith.constant 0 : i32
    %c0_i32_0 = arith.constant 0 : i32
    %c0_i32_1 = arith.constant 0 : i32
    return %c0_i32, %c0_i32_0 : i32, i32
  }
  func.func @transform_2(%arg0: i32, %arg1: memref<3xf32, #tpu.memory_space<smem>>) -> (i32, i32) {
    %c0_i32 = arith.constant 0 : i32
    %c0_i32_0 = arith.constant 0 : i32
    %c0_i32_1 = arith.constant 0 : i32
    return %c0_i32, %c0_i32_0 : i32, i32
  }
  func.func @transform_3(%arg0: i32, %arg1: memref<3xf32, #tpu.memory_space<smem>>) -> (i32, i32) {
    %c0_i32 = arith.constant 0 : i32
    %c0_i32_0 = arith.constant 0 : i32
    %c0_i32_1 = arith.constant 0 : i32
    return %c0_i32, %c0_i32_0 : i32, i32
  }
  func.func @transform_4(%arg0: i32, %arg1: memref<3xf32, #tpu.memory_space<smem>>) -> (i32, i32) {
    %c0_i32 = arith.constant 0 : i32
    %c0_i32_0 = arith.constant 0 : i32
    return %c0_i32, %arg0 : i32, i32
  }
}

</mosaic_0001>

<bundles_post_ra>
// kernel: evolving_torus_splat_forward_batch.1
= control target key start
LH: loop header
LB: loop body
LE: loop exit
PB: predicated region body
PF: predicated region fallthrough
CT: control target
= control target key end

     0   :  { %s759_s0 = inlined_call_operand.vmem [shape: f32[3], index: 0, kind: input, shape index: {}]   ;;  %s760_s1 = inlined_call_operand.vmem [shape: f32[32,256], index: 1, kind: input, shape index: {}]   ;;  %s761_s2 = inlined_call_operand.vmem [shape: f32[32,5], index: 2, kind: input, shape index: {}]   ;;  %s762_s3 = inlined_call_operand.vmem [shape: f32[4,1], index: 3, kind: input, shape index: {}]   ;;  %s763_s4 = inlined_call_operand.vmem [shape: f32[4,1], index: 4, kind: input, shape index: {}]   ;;  %s764_s5 = inlined_call_operand.hbm [shape: f32[1,256], index: 5, kind: output, shape index: {}]  }
   0x1   :  { %s10_s20 = sshll.u32 %s759_s0, 4  ;;  %s11_s20 = int_to_ptr.vmem [resolvable:$true] %s10_s20 }
   0x2   :  { %s521_s21 = scalar_lea.vmem %s11_s20, 16  ;;  %p526_p1 = scmp.lt.s32.totalorder %s11_s20, %s11_s20 }
   0x3   :  { %p522_p0 = scmp.ne.s32.totalorder %s11_s20, %s521_s21  ;;  %p527_p2 = scmp.lt.s32.totalorder %s521_s21, %s521_s21 }
   0x5   :  { %p528_p3 = por %p527_p2, %p526_p1 }
   0x7   :  { %p529_p4 = pnand %p528_p3, %p522_p0 }
   0x9   :  { %532 = shalt.err (!%p529_p4)  }
   0xa   :  { %s557_s22 = smov [#allocation3]  }
   0xb   :  { %13 = dma.vmem_to_smem %s11_s20, 16, %s557_s22, [#allocation2] }
   0xc   :  { %553 = dma.done.wait [#allocation2], 16 }
   0xd   :  { %554 = vsyncadd [#allocation2], 4294967280 }
   0xe   :  { %15 = sfence }
   0xf   :  { %v601_v0 = vld [vmem:[%s761_s2 + $0x10] sm:$0xff]  ;;  %v39_v1 = vld [vmem:[%s761_s2] sm:$0xff]  ;;  %v558_v2 = vmov 0   ;;  %s456_s26 = sld [smem:[#allocation3 + $0x2]]  ;;  %v42_v3 = vld [vmem:[%s761_s2 + $0x18] sm:$0xff] }
  0x10   :  { %471 = vset.pattern.permute.xlu1 %v558_v2  ;;  %470 = vset.pattern.permute.xlu0 %v558_v2  ;;  %v40_v4 = vld [vmem:[%s761_s2 + $0x8] sm:$0xff] }
  0x11   :  { %55 = vperm.xlu1 %471, %v601_v0   ;;  %45 = vperm.xlu0 %470, %v39_v1  }
  0x12   :  { %16 = vsyncpa [#allocation5], 0  ;;  %v559_v6 = vmov 1   ;;  %v131_v8 = vld [vmem:[%s762_s3] sm:$0xf]  ;;  %v560_v10 = vmov 2  }
  0x13   :  { %v457_v9 = vmul.f32 -1.442695, %v131_v8  ;;  %v561_v11 = vmov 3   ;;  %v562_v13 = vmov 4   ;;  %v138_v16 = vld [vmem:[%s763_s4] sm:$0xf] }
  0x14   :  { %v629_v23 = vld [vmem:[%s760_s1] sm:$0xff]  ;;  %v634_v24 = vld [vmem:[%s760_s1 + $0x8] sm:$0xff]  ;;  %v651_v31 = vld [vmem:[%s760_s1 + $0x10] sm:$0xff]  ;;  %s681_s0 = sld [smem:[#allocation3]] }
  0x15   :  { %60 = vperm.xlu1 %471, %v42_v3   ;;  %50 = vperm.xlu0 %470, %v40_v4   ;;  %s406_s6 = sxor.u32 2147483648, %s456_s26  ;;  %v639_v27 = vld [vmem:[%s760_s1 + $0x20] sm:$0xff]  ;;  %v644_v28 = vld [vmem:[%s760_s1 + $0x28] sm:$0xff]  ;;  %v656_v32 = vld [vmem:[%s760_s1 + $0x18] sm:$0xff] }
  0x16   :  { %v407_v5 = vstv %s406_s6  ;;  %v663_v36 = vld [vmem:[%s760_s1 + $0x30] sm:$0xff]  ;;  %v668_v37 = vld [vmem:[%s760_s1 + $0x38] sm:$0xff]  ;;  %s676_s1 = sld [smem:[#allocation3 + $0x1]]  ;;  %s564_s6 = smov [#allocation4]  }
  0x17   :  { %v408_v7 = vmul.f32 1.442695, %v407_v5  ;;  %s447_s7 = sshll.u32 %s564_s6, 4  ;;  %s448_s7 = int_to_ptr.vmem [resolvable:$true] %s447_s7 }
  0x18   :  { %s533_s8 = scalar_lea.vmem %s448_s7, 32  ;;  %p538_p7 = scmp.lt.s32.totalorder %s448_s7, %s448_s7 }
  0x19   :  { %473 = vset.pattern.permute.xlu1 %v559_v6  ;;  %472 = vset.pattern.permute.xlu0 %v559_v6  ;;  %487 = vpow2.f32 %v408_v7  ;;  %p534_p6 = scmp.ne.s32.totalorder %s448_s7, %s533_s8  ;;  %p539_p8 = scmp.lt.s32.totalorder %s533_s8, %s533_s8 }
  0x1a   :  { %148 = vperm.xlu1 %473, %v40_v4   ;;  %144 = vperm.xlu0 %472, %v39_v1   ;;  %489 = vpow2.f32 %v457_v9  ;;  %s26_s27 = sand.u32 2147483647, %s681_s0 }
  0x1b   :  { %491 = vtanh.f32 %v138_v16  ;;  %s708_s29 = sadd.f32 1e-06, %s26_s27  ;;  %p540_p9 = por %p539_p8, %p538_p7 }
  0x1c   :  { %s29_s26 = sand.u32 2147483647, %s676_s1 }
  0x1d   :  { %p703_p5 = scmp.lt.f32.partialorder %s29_s26, 0.1  ;;  %p541_p10 = pnand %p540_p9, %p534_p6 }
  0x1e   :  { %474 = vset.pattern.permute.xlu1 %v560_v10  ;;  %477 = vset.pattern.permute.xlu0 %v561_v11 }
  0x1f   :  { %209 = vperm.xlu1 %474, %v39_v1   ;;  %275 = vperm.xlu0 %477, %v39_v1   ;;  %s767_s26 = smov (%p703_p5, %s29_s26), 0.0 }
  0x23   :  { %475 = vset.pattern.permute.xlu1 %v559_v6  ;;  %478 = vset.pattern.permute.xlu0 %v560_v10 }
  0x24   :  { %152 = vperm.xlu1 %475, %v601_v0   ;;  %213 = vperm.xlu0 %478, %v40_v4  }
  0x26   :  { %v488_v12 = vpop.eup %487 }
  0x27   :  { %458 = vpush %v488_v12  ;;  %v490_v14 = vpop.eup %489 }
  0x28   :  { %476 = vset.pattern.permute.xlu1 %v560_v10  ;;  %221 = vperm.xlu0 %478, %v42_v3   ;;  %v135_v15 = vadd.f32 1.0, %v490_v14  ;;  %v492_v17 = vpop.eup %491 }
  0x29   :  { %217 = vperm.xlu1 %476, %v601_v0  }
  0x2a   :  { %493 = vrcp.f32 %v135_v15 }
  0x2c   :  { %483 = vset.pattern.permute.xlu0 %v562_v13 }
  0x2d   :  { %479 = vset.pattern.permute.xlu1 %v561_v11  ;;  %345 = vperm.xlu0 %483, %v40_v4  }
  0x2e   :  { %279 = vperm.xlu1 %479, %v40_v4  }
  0x31   :  { %353 = vperm.xlu0 %483, %v42_v3  }
  0x32   :  { %480 = vset.pattern.permute.xlu1 %v559_v6 }
  0x33   :  { %156 = vperm.xlu1 %480, %v42_v3  }
  0x37   :  { %481 = vset.pattern.permute.xlu1 %v561_v11  ;;  %v494_v18 = vpop.eup %493 }
  0x38   :  { %283 = vperm.xlu1 %481, %v601_v0   ;;  %v141_v19 = vmul.f32 %v494_v18, %v492_v17  ;;  %vm140_vm0 = vcmp.gt.f32.partialorder %v494_v18, 0.1 }
  0x3a   :  { %v142_v20 = vsel %vm140_vm0, %v141_v19, 0.0 }
  0x3c   :  { %482 = vset.pattern.permute.xlu1 %v562_v13 }
  0x3d   :  { %341 = vperm.xlu1 %482, %v39_v1  }
  0x41   :  { %484 = vset.pattern.permute.xlu1 %v561_v11 }
  0x42   :  { %287 = vperm.xlu1 %484, %v42_v3  }
  0x46   :  { %485 = vset.pattern.permute.xlu1 %v562_v13 }
  0x47   :  { %349 = vperm.xlu1 %485, %v601_v0  }
  0x4b   :  { %486 = vset.pattern.permute.xlu1 %v558_v2 }
  0x4c   :  { %201 = vperm.xlu1 %486, %v142_v20  }
  0x58   :  { %s459_s4 = spop %458 }
  0x59   :  { %s411_s9 = sadd.f32 1.0, %s459_s4 }
  0x5b   :  { %v412_v21 = vstv %s411_s9 }
  0x5c   :  { %495 = vrcp.f32 %v412_v21 }
  0x69   :  { %v496_v22 = vpop.eup %495 }
  0x6a   :  { %460 = vpush %v496_v22 }
  0x8c   :  { %v56_v25 = vpop.permute.xlu1 %55  ;;  %v46_v26 = vpop.permute.xlu0 %45 }
  0x8d   :  { %v63_v29 = vsub.f32 %v629_v23, %v46_v26  ;;  %v64_v30 = vsub.f32 %v634_v24, %v46_v26  ;;  %v67_v33 = vsub.f32 %v639_v27, %v56_v25  ;;  %v68_v34 = vsub.f32 %v644_v28, %v56_v25 }
  0x8f   :  { %v71_v39 = vmul.f32 %v63_v29, %v63_v29  ;;  %v72_v40 = vmul.f32 %v64_v30, %v64_v30  ;;  %v75_v47 = vmul.f32 %v67_v33, %v67_v33  ;;  %v76_v48 = vmul.f32 %v68_v34, %v68_v34 }
  0x90   :  { %v61_v35 = vpop.permute.xlu1 %60  ;;  %v51_v38 = vpop.permute.xlu0 %50 }
  0x91   :  { %v65_v41 = vsub.f32 %v651_v31, %v51_v38  ;;  %v66_v42 = vsub.f32 %v656_v32, %v51_v38  ;;  %v69_v43 = vsub.f32 %v663_v36, %v61_v35  ;;  %v70_v44 = vsub.f32 %v668_v37, %v61_v35 }
  0x93   :  { %v73_v45 = vmul.f32 %v65_v41, %v65_v41  ;;  %v74_v46 = vmul.f32 %v66_v42, %v66_v42  ;;  %v77_v53 = vmul.f32 %v69_v43, %v69_v43  ;;  %v78_v54 = vmul.f32 %v70_v44, %v70_v44 }
  0x95   :  { %v79_v49 = vadd.f32 %v73_v45, %v71_v39  ;;  %v88_v50 = vadd.f32 %v74_v46, %v72_v40  ;;  %v149_v51 = vpop.permute.xlu1 %148  ;;  %v145_v52 = vpop.permute.xlu0 %144 }
  0x96   :  { %v161_v15 = vsub.f32 %v651_v31, %v149_v51  ;;  %v162_v16 = vsub.f32 %v656_v32, %v149_v51  ;;  %v159_v26 = vsub.f32 %v629_v23, %v145_v52  ;;  %v160_v34 = vsub.f32 %v634_v24, %v145_v52 }
  0x97   :  { %v80_v55 = vadd.f32 %v79_v49, %v75_v47  ;;  %v89_v56 = vadd.f32 %v88_v50, %v76_v48 }
  0x98   :  { %v169_v46 = vmul.f32 %v161_v15, %v161_v15  ;;  %v167_v47 = vmul.f32 %v159_v26, %v159_v26  ;;  %v170_v50 = vmul.f32 %v162_v16, %v162_v16  ;;  %v168_v51 = vmul.f32 %v160_v34, %v160_v34 }
  0x99   :  { %v81_v57 = vadd.f32 %v80_v55, %v77_v53  ;;  %v90_v58 = vadd.f32 %v89_v56, %v78_v54 }
  0x9a   :  { %v210_v59 = vpop.permute.xlu1 %209  ;;  %v674_v60 = vpop.permute.xlu0 %275 }
  0x9b   :  { %v82_v61 = vrot.slane %v81_v57, 4  ;;  %v91_v62 = vrot.slane %v90_v58, 4  ;;  %v224_v5 = vsub.f32 %v629_v23, %v210_v59  ;;  %v225_v10 = vsub.f32 %v634_v24, %v210_v59  ;;  %s461_s30 = spop %460 }
  0x9c   :  { %v290_v52 = vsub.f32 %v629_v23, %v674_v60 }
  0x9d   :  { %v83_v63 = vadd.f32 %v82_v61, %v81_v57  ;;  %v92_v0 = vadd.f32 %v91_v62, %v90_v58  ;;  %v232_v17 = vmul.f32 %v224_v5, %v224_v5  ;;  %v233_v29 = vmul.f32 %v225_v10, %v225_v10 }
  0x9e   :  { %v175_v57 = vadd.f32 %v169_v46, %v167_v47  ;;  %v291_v58 = vsub.f32 %v634_v24, %v674_v60  ;;  %v111_v5 = vstv %s708_s29 }
  0x9f   :  { %v84_v1 = vrot.slane %v83_v63, 2  ;;  %v93_v2 = vrot.slane %v92_v0, 2  ;;  %v153_v3 = vpop.permute.xlu1 %152  ;;  %v214_v4 = vpop.permute.xlu0 %213 }
  0xa0   :  { %v226_v6 = vsub.f32 %v651_v31, %v214_v4  ;;  %v227_v7 = vsub.f32 %v656_v32, %v214_v4  ;;  %v163_v35 = vsub.f32 %v639_v27, %v153_v3  ;;  %v164_v42 = vsub.f32 %v644_v28, %v153_v3 }
  0xa1   :  { %v85_v8 = vadd.f32 %v84_v1, %v83_v63  ;;  %v94_v9 = vadd.f32 %v93_v2, %v92_v0  ;;  %v184_v0 = vadd.f32 %v170_v50, %v168_v51  ;;  %v298_v3 = vmul.f32 %v290_v52, %v290_v52 }
  0xa2   :  { %v234_v13 = vmul.f32 %v226_v6, %v226_v6  ;;  %v235_v18 = vmul.f32 %v227_v7, %v227_v7  ;;  %v171_v53 = vmul.f32 %v163_v35, %v163_v35  ;;  %v172_v56 = vmul.f32 %v164_v42, %v164_v42 }
  0xa3   :  { %v86_v11 = vrot.slane %v85_v8, 1  ;;  %v95_v12 = vrot.slane %v94_v9, 1  ;;  %v222_v14 = vpop.permute.xlu0 %221  ;;  %v118_v6 = vstv %s767_s26  ;;  %v299_v60 = vmul.f32 %v291_v58, %v291_v58 }
  0xa4   :  { %v218_v19 = vpop.permute.xlu1 %217  ;;  %v230_v30 = vsub.f32 %v663_v36, %v222_v14  ;;  %v231_v33 = vsub.f32 %v668_v37, %v222_v14  ;;  %v240_v38 = vadd.f32 %v234_v13, %v232_v17  ;;  %v249_v39 = vadd.f32 %v235_v18, %v233_v29 }
  0xa5   :  { %v686_v20 = vadd.f32 %v86_v11, %v85_v8  ;;  %v688_v21 = vadd.f32 %v95_v12, %v94_v9  ;;  %v228_v22 = vsub.f32 %v639_v27, %v218_v19  ;;  %v229_v25 = vsub.f32 %v644_v28, %v218_v19 }
  0xa6   :  { %v238_v43 = vmul.f32 %v230_v30, %v230_v30  ;;  %v239_v44 = vmul.f32 %v231_v33, %v231_v33  ;;  %v176_v4 = vadd.f32 %v175_v57, %v171_v53  ;;  %v185_v7 = vadd.f32 %v184_v0, %v172_v56 }
  0xa7   :  { %497 = vrsqrt.f32 %v686_v20  ;;  %v236_v40 = vmul.f32 %v228_v22, %v228_v22  ;;  %v237_v41 = vmul.f32 %v229_v25, %v229_v25  ;;  %vm99_vm1 = vcmp.eq.f32.partialorder %v686_v20, inf }
  0xa8   :  { %499 = vrsqrt.f32 %v688_v21  ;;  %v346_v63 = vpop.permute.xlu0 %345  ;;  %v102_v13 = vand.u32 2147483648, %v686_v20  ;;  %vm106_vm2 = vcmp.eq.f32.partialorder %v688_v21, inf  ;;  %v109_v18 = vand.u32 2147483648, %v688_v21 }
  0xa9   :  { %v280_v45 = vpop.permute.xlu1 %279  ;;  %v241_v48 = vadd.f32 %v240_v38, %v236_v40  ;;  %v250_v49 = vadd.f32 %v249_v39, %v237_v41  ;;  %v358_v10 = vsub.f32 %v651_v31, %v346_v63  ;;  %v359_v25 = vsub.f32 %v656_v32, %v346_v63 }
  0xaa   :  { %v292_v19 = vsub.f32 %v651_v31, %v280_v45  ;;  %v293_v22 = vsub.f32 %v656_v32, %v280_v45  ;;  %vm101_vm3 = vcmp.eq.f32.partialorder %v686_v20, 0.0  ;;  %vm108_vm4 = vcmp.eq.f32.partialorder %v688_v21, 0.0 }
  0xab   :  { %v242_v54 = vadd.f32 %v241_v48, %v238_v43  ;;  %v251_v55 = vadd.f32 %v250_v49, %v239_v44  ;;  %v366_v34 = vmul.f32 %v358_v10, %v358_v10  ;;  %v367_v47 = vmul.f32 %v359_v25, %v359_v25 }
  0xac   :  { %v354_v41 = vpop.permute.xlu0 %353  ;;  %v300_v44 = vmul.f32 %v292_v19, %v292_v19  ;;  %v301_v45 = vmul.f32 %v293_v22, %v293_v22 }
  0xad   :  { %v243_v59 = vrot.slane %v242_v54, 4  ;;  %v252_v61 = vrot.slane %v251_v55, 4  ;;  %v362_v49 = vsub.f32 %v663_v36, %v354_v41  ;;  %v363_v53 = vsub.f32 %v668_v37, %v354_v41 }
  0xae   :  { %v157_v62 = vpop.permute.xlu1 %156 }
  0xaf   :  { %v165_v1 = vsub.f32 %v663_v36, %v157_v62  ;;  %v166_v2 = vsub.f32 %v668_v37, %v157_v62  ;;  %v244_v11 = vadd.f32 %v243_v59, %v242_v54  ;;  %v253_v12 = vadd.f32 %v252_v61, %v251_v55 }
  0xb0   :  { %v306_v59 = vadd.f32 %v300_v44, %v298_v3 }
  0xb1   :  { %v173_v8 = vmul.f32 %v165_v1, %v165_v1  ;;  %v174_v9 = vmul.f32 %v166_v2, %v166_v2  ;;  %v245_v38 = vrot.slane %v244_v11, 2  ;;  %v254_v39 = vrot.slane %v253_v12, 2 }
  0xb2   :  { %v370_v2 = vmul.f32 %v362_v49, %v362_v49 }
  0xb3   :  { %v177_v14 = vadd.f32 %v176_v4, %v173_v8  ;;  %v186_v15 = vadd.f32 %v185_v7, %v174_v9  ;;  %v284_v16 = vpop.permute.xlu1 %283  ;;  %v246_v51 = vadd.f32 %v245_v38, %v244_v11  ;;  %v255_v55 = vadd.f32 %v254_v39, %v253_v12 }
  0xb4   :  { %v498_v17 = vpop.eup %497  ;;  %v294_v40 = vsub.f32 %v639_v27, %v284_v16  ;;  %v295_v31 = vsub.f32 %v644_v28, %v284_v16  ;;  %v371_v16 = vmul.f32 %v363_v53, %v363_v53 }
  0xb5   :  { %v500_v26 = vpop.eup %499  ;;  %v98_v29 = vmul.f32 %v498_v17, %v686_v20  ;;  %v178_v30 = vrot.slane %v177_v14, 4  ;;  %v187_v33 = vrot.slane %v186_v15, 4  ;;  %v247_v7 = vrot.slane %v246_v51, 1 }
  0xb6   :  { %v105_v35 = vmul.f32 %v500_v26, %v688_v21  ;;  %v302_v56 = vmul.f32 %v294_v40, %v294_v40  ;;  %v303_v57 = vmul.f32 %v295_v31, %v295_v31  ;;  %v256_v10 = vrot.slane %v255_v55, 1 }
  0xb7   :  { %v179_v42 = vadd.f32 %v178_v30, %v177_v14  ;;  %v188_v43 = vadd.f32 %v187_v33, %v186_v15  ;;  %v100_v32 = vsel %vm99_vm1, %v686_v20, %v98_v29  ;;  %v315_v20 = vadd.f32 %v301_v45, %v299_v60 }
  0xb8   :  { %v342_v46 = vpop.permute.xlu1 %341  ;;  %v103_v50 = vsel %vm101_vm3, %v102_v13, %v100_v32  ;;  %v107_v54 = vsel %vm106_vm2, %v688_v21, %v105_v35  ;;  %v307_v3 = vadd.f32 %v306_v59, %v302_v56  ;;  %v248_v22 = vadd.f32 %v247_v7, %v246_v51 }
  0xb9   :  { %v180_v48 = vrot.slane %v179_v42, 2  ;;  %v189_v52 = vrot.slane %v188_v43, 2  ;;  %v110_v58 = vsel %vm108_vm4, %v109_v18, %v107_v54  ;;  %v356_v61 = vsub.f32 %v629_v23, %v342_v46 }
  0xba   :  { %v112_v62 = vsub.f32 %v103_v50, %v111_v5  ;;  %v357_v0 = vsub.f32 %v634_v24, %v342_v46  ;;  %v113_v4 = vsub.f32 %v110_v58, %v111_v5  ;;  %v316_v60 = vadd.f32 %v315_v20, %v303_v57 }
  0xbb   :  { %v181_v63 = vadd.f32 %v180_v48, %v179_v42  ;;  %v190_v8 = vadd.f32 %v189_v52, %v188_v43  ;;  %v364_v23 = vmul.f32 %v356_v61, %v356_v61  ;;  %v257_v25 = vadd.f32 %v256_v10, %v255_v55 }
  0xbc   :  { %v114_v11 = vand.u32 2147483647, %v112_v62  ;;  %v115_v14 = vand.u32 2147483647, %v113_v4  ;;  %v365_v15 = vmul.f32 %v357_v0, %v357_v0  ;;  %v258_v45 = vmul.f32 -0.5, %v248_v22 }
  0xbd   :  { %v288_v1 = vpop.permute.xlu1 %287  ;;  %v182_v24 = vrot.slane %v181_v63, 1  ;;  %v191_v17 = vrot.slane %v190_v8, 1  ;;  %v372_v30 = vadd.f32 %v366_v34, %v364_v23  ;;  %v259_v49 = vmul.f32 -0.5, %v257_v25 }
  0xbe   :  { %v296_v21 = vsub.f32 %v663_v36, %v288_v1  ;;  %v297_v9 = vsub.f32 %v668_v37, %v288_v1  ;;  %v119_v5 = vsub.f32 %v114_v11, %v118_v6  ;;  %v120_v37 = vsub.f32 %v115_v14, %v118_v6 }
  0xbf   :  { %v183_v39 = vadd.f32 %v182_v24, %v181_v63  ;;  %v381_v40 = vadd.f32 %v367_v47, %v365_v15  ;;  %v192_v43 = vadd.f32 %v191_v17, %v190_v8  ;;  %v260_v55 = vmul.f32 1.442695, %v258_v45 }
  0xc0   :  { %v304_v12 = vmul.f32 %v296_v21, %v296_v21  ;;  %v305_v13 = vmul.f32 %v297_v9, %v297_v9  ;;  %v121_v38 = vand.u32 2147483647, %v119_v5  ;;  %v122_v44 = vand.u32 2147483647, %v120_v37 }
  0xc1   :  { %v194_v52 = vmul.f32 -0.5, %v192_v43  ;;  %v262_v59 = vmul.f32 1.442695, %v259_v49  ;;  %501 = vpow2.f32 %v260_v55 }
  0xc2   :  { %v308_v18 = vadd.f32 %v307_v3, %v304_v12  ;;  %v317_v19 = vadd.f32 %v316_v60, %v305_v13  ;;  %v350_v36 = vpop.permute.xlu1 %349  ;;  %v123_v48 = vmul.f32 -0.5, %v121_v38  ;;  %v124_v47 = vmul.f32 -0.5, %v122_v44 }
  0xc3   :  { %v360_v26 = vsub.f32 %v639_v27, %v350_v36  ;;  %v361_v29 = vsub.f32 %v644_v28, %v350_v36  ;;  %v193_v28 = vmul.f32 -0.5, %v183_v39  ;;  %v197_v1 = vmul.f32 1.442695, %v194_v52 }
  0xc4   :  { %v309_v33 = vrot.slane %v308_v18, 4  ;;  %v318_v35 = vrot.slane %v317_v19, 4  ;;  %v125_v58 = vmul.f32 %v123_v48, %v121_v38  ;;  %v126_v8 = vmul.f32 %v124_v47, %v122_v44 }
  0xc5   :  { %v368_v41 = vmul.f32 %v360_v26, %v360_v26  ;;  %v369_v42 = vmul.f32 %v361_v29, %v361_v29  ;;  %v195_v62 = vmul.f32 1.442695, %v193_v28  ;;  %503 = vpow2.f32 %v262_v59 }
  0xc6   :  { %v310_v31 = vadd.f32 %v309_v33, %v308_v18  ;;  %v319_v32 = vadd.f32 %v318_v35, %v317_v19  ;;  %v127_v9 = vmul.f32 1.442695, %v125_v58  ;;  %v129_v13 = vmul.f32 1.442695, %v126_v8 }
  0xc7   :  { %v373_v6 = vadd.f32 %v372_v30, %v368_v41  ;;  %v382_v46 = vadd.f32 %v381_v40, %v369_v42  ;;  %505 = vpow2.f32 %v195_v62  ;;  %v202_v29 = vpop.permute.xlu1 %201  ;;  %v415_v58 = vstv %s461_s30 }
  0xc8   :  { %v311_v27 = vrot.slane %v310_v31, 2  ;;  %v320_v50 = vrot.slane %v319_v32, 2  ;;  %507 = vpow2.f32 %v197_v1 }
  0xc9   :  { %v374_v34 = vadd.f32 %v373_v6, %v370_v2  ;;  %v383_v51 = vadd.f32 %v382_v46, %v371_v16  ;;  %509 = vpow2.f32 %v127_v9  ;;  %v424_v6 = vlaneseq }
  0xca   :  { %v312_v53 = vadd.f32 %v311_v27, %v310_v31  ;;  %v321_v54 = vadd.f32 %v320_v50, %v319_v32  ;;  %v563_v27 = vmov 1966171168  }
  0xcb   :  { %v375_v56 = vrot.slane %v374_v34, 4  ;;  %v384_v57 = vrot.slane %v383_v51, 4  ;;  %v422_v50 = vunpack.c.l.s4 %v563_v27  ;;  %v425_v55 = vshrl.u32 %v424_v6, 7 }
  0xcc   :  { %v313_v20 = vrot.slane %v312_v53, 1  ;;  %v322_v61 = vrot.slane %v321_v54, 1  ;;  %vm438_vm5 = vcmp.lt.s32.totalorder %v424_v6, 256 }
  0xcd   :  { %v376_v63 = vadd.f32 %v375_v56, %v374_v34  ;;  %v385_v0 = vadd.f32 %v384_v57, %v383_v51  ;;  %v423_v59 = vunpack.c.0.s8 %v422_v50 }
  0xce   :  { %v314_v4 = vadd.f32 %v313_v20, %v312_v53  ;;  %v323_v7 = vadd.f32 %v322_v61, %v321_v54  ;;  %v502_v36 = vpop.eup %501 }
  0xcf   :  { %v377_v2 = vrot.slane %v376_v63, 2  ;;  %v386_v21 = vrot.slane %v385_v0, 2  ;;  %v264_v40 = vmul.f32 %v502_v36, %v202_v29 }
  0xd0   :  { %v324_v10 = vmul.f32 -0.5, %v314_v4  ;;  %v325_v3 = vmul.f32 -0.5, %v323_v7 }
  0xd1   :  { %v378_v60 = vadd.f32 %v377_v2, %v376_v63  ;;  %v387_v11 = vadd.f32 %v386_v21, %v385_v0  ;;  %v268_v44 = vrot.slane %v264_v40, 1  ;;  %v426_v0 = vsub.s32 %v423_v59, %v425_v55 }
  0xd2   :  { %v326_v23 = vmul.f32 1.442695, %v324_v10  ;;  %v328_v12 = vmul.f32 1.442695, %v325_v3  ;;  %v504_v37 = vpop.eup %503 }
  0xd3   :  { %v379_v14 = vrot.slane %v378_v60, 1  ;;  %v388_v24 = vrot.slane %v387_v11, 1  ;;  %v265_v42 = vmul.f32 %v504_v37, %v202_v29 }
  0xd4   :  { %511 = vpow2.f32 %v326_v23  ;;  %v506_v22 = vpop.eup %505 }
  0xd5   :  { %513 = vpow2.f32 %v328_v12  ;;  %v380_v15 = vadd.f32 %v379_v14, %v378_v60  ;;  %v389_v16 = vadd.f32 %v388_v24, %v387_v11  ;;  %v508_v25 = vpop.eup %507  ;;  %v204_v33 = vmul.f32 %v506_v22, %v202_v29 }
  0xd6   :  { %515 = vpow2.f32 %v129_v13  ;;  %v510_v26 = vpop.eup %509  ;;  %v205_v38 = vmul.f32 %v508_v25, %v202_v29  ;;  %v269_v48 = vrot.slane %v265_v42, 1 }
  0xd7   :  { %v390_v5 = vmul.f32 -0.5, %v380_v15  ;;  %v391_v17 = vmul.f32 -0.5, %v389_v16  ;;  %v206_v31 = vadd.f32 %v510_v26, %v204_v33 }
  0xd9   :  { %v392_v18 = vmul.f32 1.442695, %v390_v5  ;;  %v394_v19 = vmul.f32 1.442695, %v391_v17  ;;  %v272_v34 = vadd.f32 %v268_v44, %v206_v31 }
  0xdb   :  { %517 = vpow2.f32 %v392_v18 }
  0xdc   :  { %519 = vpow2.f32 %v394_v19 }
  0xe1   :  { %v512_v30 = vpop.eup %511 }
  0xe2   :  { %v514_v35 = vpop.eup %513  ;;  %v330_v41 = vmul.f32 %v512_v30, %v202_v29 }
  0xe3   :  { %v516_v39 = vpop.eup %515  ;;  %v331_v43 = vmul.f32 %v514_v35, %v202_v29 }
  0xe4   :  { %v207_v32 = vadd.f32 %v516_v39, %v205_v38  ;;  %v334_v45 = vrot.slane %v330_v41, 2 }
  0xe5   :  { %v335_v49 = vrot.slane %v331_v43, 2 }
  0xe6   :  { %v273_v52 = vadd.f32 %v269_v48, %v207_v32  ;;  %v338_v54 = vadd.f32 %v334_v45, %v272_v34 }
  0xe8   :  { %v518_v46 = vpop.eup %517  ;;  %v339_v56 = vadd.f32 %v335_v49, %v273_v52 }
  0xe9   :  { %v520_v28 = vpop.eup %519  ;;  %v396_v51 = vmul.f32 %v518_v46, %v202_v29 }
  0xea   :  { %v397_v53 = vmul.f32 %v520_v28, %v202_v29 }
  0xeb   :  { %v400_v47 = vrot.slane %v396_v51, 3 }
  0xec   :  { %v401_v57 = vrot.slane %v397_v53, 3 }
  0xed   :  { %v404_v20 = vadd.f32 %v400_v47, %v338_v54 }
  0xee   :  { %v405_v61 = vadd.f32 %v401_v57, %v339_v56 }
  0xef   :  { %v416_v62 = vmul.f32 %v415_v58, %v404_v20 }
  0xf0   :  { %v417_v63 = vmul.f32 %v415_v58, %v405_v61 }
  0xf2   :  { %v420_v1 = vcombine.low %v416_v62, %v417_v63 }
  0xf4   :  { %v427_v4 = vrot.slane %v420_v1, %v426_v0 }
  0xf6   :  { %v434_v7 = vrot.slane %v427_v4, %v426_v0 }
  0xf8   :  { %440 = vst.msk [vmem:[#allocation4] sm:$0x3] %vm438_vm5, %v434_v7 }
  0xf9   :  { %544 = shalt.err (!%p541_p10)
}
  0xfa   :  { %450 = dma.vmem_to_hbm [thread:$0]  %s448_s7, 32, %s764_s5, [#allocation5]  }
  0xfb   :  { %555 = dma.done.wait [#allocation5], 32  }
  0xfc   :  { %556 = vsyncadd [#allocation5], 4294967264 }
  0xfd   :  { %454 = vsyncpa [#allocation5], 1 }

</bundles_post_ra>
